<compile_context>
chip_gen: v7x
topology: tpu7x:2x2x1
jax: 0.10.0
libtpu: 0.0.40
codegen_flags: <defaults>
</compile_context>

<pallas_src>
import functools

import jax
import jax.numpy as jnp
from jax.experimental import pallas as pl
from jax.experimental.pallas import tpu as pltpu


# ----------------------------------------------------------------------------
# Pallas kernel: fused 3x3/s2 conv (2 matmuls over phase-split planes)
#                + folded BatchNorm shift + ReLU6
# ----------------------------------------------------------------------------
def _stem_kernel(x_ref, w_ref, shift_ref, o_ref, *, bt, ow, n_sp):
    # x_ref:     (bt, 6*Cin, (OH+1)*OW)  bf16  phase-split input planes
    # w_ref:     (2, Cout, 6*Cin)        f32   conv weight (BN scale folded),
    #                                          one matrix per row offset di
    # shift_ref: (Cout, 1)               f32   beta - mean * scale
    # o_ref:     (bt, Cout, OH*OW)       bf16  NCHW output, spatial flattened
    w0 = w_ref[0]                       # taps with kh in {0,1}
    w1 = w_ref[1]                       # taps with kh == 2 (row offset +1)
    shift = shift_ref[...]
    for n in range(bt):                 # static unroll over images in this block
        p0 = x_ref[n, :, 0:n_sp].astype(jnp.float32)          # rows oh + 0
        p1 = x_ref[n, :, ow:ow + n_sp].astype(jnp.float32)    # rows oh + 1
        acc = jnp.dot(w0, p0, preferred_element_type=jnp.float32)
        acc = acc + jnp.dot(w1, p1, preferred_element_type=jnp.float32)
        y = jnp.clip(acc + shift, 0.0, 6.0)                   # BN shift + ReLU6
        o_ref[n] = y.astype(o_ref.dtype)                      # bf16 store


def stem_conv_bn_relu6(x_nchw, w, bn_gamma, bn_beta, bn_mean, bn_var, eps=1e-5):
    B, Cin, H, W = x_nchw.shape
    Cout = w.shape[0]
    assert w.shape[1:] == (Cin, 3, 3)
    # TODO(synk): odd H/W would need an extra bottom/right pad; MobileFormer uses even sizes.
    assert H % 2 == 0 and W % 2 == 0
    OH, OW = H // 2, W // 2
    n_sp = OH * OW
    s1 = (OH + 1) * OW

    # ---- wrapper prep (cheap XLA): cast to bf16 FIRST, then pad + phase split.
    # cols[b, (kw*2+py)*Cin + ci, i*OW + j] = x_pad[b, ci, 2i+py, 2j+kw]
    xb = x_nchw.astype(jnp.bfloat16)
    xp = jnp.pad(xb, ((0, 0), (0, 0), (1, 1), (1, 1)))         # (B, Cin, H+2, W+2)
    variants = []
    for kw in range(3):            # column tap (lane-direction stride handled here, once)
        for py in range(2):        # row phase
            variants.append(xp[:, :, py::2, kw::2][:, :, :, :OW])   # (B,Cin,OH+1,OW)
    cols = jnp.stack(variants, axis=1).reshape(B, 6 * Cin, s1)      # bf16

    # ---- fold eval-mode BatchNorm into the weights (scale) + a shift vector
    scale = bn_gamma.astype(jnp.float32) / jnp.sqrt(bn_var.astype(jnp.float32) + eps)
    shift = bn_beta.astype(jnp.float32) - bn_mean.astype(jnp.float32) * scale
    wf = w.astype(jnp.float32) * scale[:, None, None, None]         # (Cout,Cin,3,3)
    # di = 0 uses kh in {0,1} (kh == row phase py); di = 1 uses kh == 2 (py == 0 only).
    w0 = jnp.transpose(wf[:, :, 0:2, :], (0, 3, 2, 1)).reshape(Cout, 6 * Cin)
    w1_part = jnp.transpose(wf[:, :, 2, :], (0, 2, 1))              # (Cout, 3, Cin)
    w1 = jnp.stack([w1_part, jnp.zeros_like(w1_part)], axis=2).reshape(Cout, 6 * Cin)
    w_mat = jnp.stack([w0, w1], axis=0)                             # (2, Cout, 6*Cin) f32
    shift2d = shift.reshape(Cout, 1)

    # ---- batch tiling: one grid step for tiny problems, one image per step otherwise
    per_img_bytes = (6 * Cin * s1 + Cout * n_sp) * 2
    bt = B if B * per_img_bytes <= (2 << 20) else 1
    steps = B // bt

    # vmem limit from the actual per-step footprint (double-buffered) + headroom
    step_bytes = bt * per_img_bytes
    vmem_limit = int(min(96 << 20, max(16 << 20, 6 * step_bytes + (2 << 20))))

    kernel = functools.partial(_stem_kernel, bt=bt, ow=OW, n_sp=n_sp)
    cost = pl.CostEstimate(
        flops=2 * 2 * B * n_sp * (6 * Cin) * Cout,
        transcendentals=0,
        bytes_accessed=int(cols.size) * 2 + int(w_mat.size) * 4
        + Cout * 4 + B * Cout * n_sp * 2,
    )

    out = pl.pallas_call(
        kernel,
        out_shape=jax.ShapeDtypeStruct((B, Cout, n_sp), jnp.bfloat16),
        grid_spec=pltpu.PrefetchScalarGridSpec(
            num_scalar_prefetch=0,
            grid=(steps,),
            in_specs=[
                pl.BlockSpec((bt, 6 * Cin, s1), lambda i: (i, 0, 0)),
                pl.BlockSpec((2, Cout, 6 * Cin), lambda i: (0, 0, 0)),
                pl.BlockSpec((Cout, 1), lambda i: (0, 0)),
            ],
            out_specs=pl.BlockSpec((bt, Cout, n_sp), lambda i: (i, 0, 0)),
        ),
        compiler_params=pltpu.CompilerParams(
            dimension_semantics=("parallel",),
            vmem_limit_bytes=vmem_limit,
        ),
        cost_estimate=cost,
    )(cols, w_mat, shift2d)

    # (B, Cout, OH*OW) -> NCHW; row-major compatible, layout-free reshape.
    return out.reshape(B, Cout, OH, OW)


# ----------------------------------------------------------------------------
# MobileFormer (block_args=[]): tokens + stem + identity features + dual concat
# ----------------------------------------------------------------------------
class MobileFormerJAX:
    def __init__(self, key, in_chans=3, stem_chs=16, token_dim=128, token_num=6):
        k1, k2, k3 = jax.random.split(key, 3)
        # nn.Embedding(token_num, token_dim) weight
        self.tokens = 0.02 * jax.random.normal(k1, (token_num, token_dim), jnp.float32)
        # Conv2d(in_chans, stem_chs, 3, stride=2, padding=1, bias=False)
        fan_in = in_chans * 3 * 3
        self.stem_w = jax.random.normal(
            k2, (stem_chs, in_chans, 3, 3), jnp.float32) * (2.0 / fan_in) ** 0.5
        # BatchNorm2d(stem_chs), eval-mode statistics (deterministic synthetic)
        self.bn_gamma = jnp.ones((stem_chs,), jnp.float32)
        self.bn_beta = jnp.zeros((stem_chs,), jnp.float32)
        self.bn_mean = 0.1 * jax.random.normal(k3, (stem_chs,), jnp.float32)
        self.bn_var = jnp.ones((stem_chs,), jnp.float32)

    def _make_tokens(self, bs):
        # tokens = z[None].repeat(bs,1,1).permute(1,0,2) -> (token_num, bs, token_dim)
        z = self.tokens
        return jnp.transpose(jnp.broadcast_to(z[None], (bs,) + z.shape), (1, 0, 2))

    def forward_features(self, x):
        bs = x.shape[0]
        tokens = self._make_tokens(bs)
        del tokens
        # TODO(synk): MobileFormer blocks (eval(b) classes) are not present in the
        # provided source; model is instantiated with block_args=[] so
        # self.features is an identity on (x, tokens).
        return stem_conv_bn_relu6(x, self.stem_w, self.bn_gamma, self.bn_beta,
                                  self.bn_mean, self.bn_var)

    def __call__(self, x_pair):
        x0, x1 = x_pair
        bs = x0.shape[0]
        tokens = self._make_tokens(bs)
        del tokens                                             # identity features
        # Shared stem weights -> run both images in ONE pallas_call by stacking
        # along the batch axis, then split back for the channel-dim concat.
        xs = jnp.concatenate((x0, x1), axis=0)                 # (2B, C, H, W)
        y = stem_conv_bn_relu6(xs, self.stem_w, self.bn_gamma, self.bn_beta,
                               self.bn_mean, self.bn_var)
        return jnp.concatenate((y[:bs], y[bs:]), axis=1)       # torch.concat(..., dim=1)


# ----------------------------------------------------------------------------
if __name__ == "__main__":
    key = jax.random.PRNGKey(0)
    kp, kx0, kx1 = jax.random.split(key, 3)

    B, C, HW = 2, 3, 16
    x0 = jax.random.normal(kx0, (B, C, HW, HW), jnp.float32)
    x1 = jax.random.normal(kx1, (B, C, HW, HW), jnp.float32)

    model = MobileFormerJAX(kp, in_chans=C, stem_chs=16)

    out = model((x0, x1))
    out = jax.block_until_ready(out)
    assert out.shape == (B, 32, HW // 2, HW // 2), out.shape

    # Cross-check the fused Pallas stem against XLA's fp32 conv + BN + ReLU6.
    # Tolerance accounts for bf16 input/output streaming (f32 weights + accum).
    def ref_stem(x):
        y = jax.lax.conv_general_dilated(
            x, model.stem_w, window_strides=(2, 2), padding=((1, 1), (1, 1)),
            dimension_numbers=("NCHW", "OIHW", "NCHW"))
        scale = model.bn_gamma / jnp.sqrt(model.bn_var + 1e-5)
        shift = model.bn_beta - model.bn_mean * scale
        y = y * scale[None, :, None, None] + shift[None, :, None, None]
        return jnp.clip(y, 0.0, 6.0)

    ref = jnp.concatenate((ref_stem(x0), ref_stem(x1)), axis=1)
    err = float(jnp.max(jnp.abs(out.astype(jnp.float32) - ref)))
    assert jnp.allclose(out.astype(jnp.float32), ref, atol=6e-2, rtol=5e-2), err

    print("KERNEL_OK")
</pallas_src>

<mosaic_0001>
module attributes {stable_mosaic.version = 11 : i64} {
  func.func @_stem_kernel(%arg0: i32, %arg1: memref<4x18x72xbf16, #tpu.memory_space<vmem>>, %arg2: memref<2x16x18xf32, #tpu.memory_space<vmem>>, %arg3: memref<16x1xf32, #tpu.memory_space<vmem>>, %arg4: memref<4x16x64xbf16, #tpu.memory_space<vmem>>) attributes {dimension_semantics = [#tpu.dimension_semantics<parallel>], iteration_bounds = array<i64: 1>, scalar_prefetch = 0 : i64, scratch_operands = 0 : i64, tpu.core_type = #tpu.core_type<tc>, window_params = [{transform_indices = @transform_0, window_bounds = array<i64: 4, 18, 72>}, {pipeline_mode = #tpu.pipeline_mode<synchronous>, transform_indices = @transform_1, window_bounds = array<i64: 2, 16, 18>}, {pipeline_mode = #tpu.pipeline_mode<synchronous>, transform_indices = @transform_2, window_bounds = array<i64: 16, 1>}, {transform_indices = @transform_3, window_bounds = array<i64: 4, 16, 64>}]} {
    %c0 = arith.constant 0 : index
    %c0_0 = arith.constant 0 : index
    %c0_1 = arith.constant 0 : index
    %0 = vector.load %arg2[%c0, %c0_0, %c0_1] : memref<2x16x18xf32, #tpu.memory_space<vmem>>, vector<1x16x18xf32>
    %1 = vector.shape_cast %0 : vector<1x16x18xf32> to vector<16x18xf32>
    %c1 = arith.constant 1 : index
    %c0_2 = arith.constant 0 : index
    %c0_3 = arith.constant 0 : index
    %2 = vector.load %arg2[%c1, %c0_2, %c0_3] : memref<2x16x18xf32, #tpu.memory_space<vmem>>, vector<1x16x18xf32>
    %3 = vector.shape_cast %2 : vector<1x16x18xf32> to vector<16x18xf32>
    %c0_4 = arith.constant 0 : index
    %c0_5 = arith.constant 0 : index
    %4 = vector.load %arg3[%c0_4, %c0_5] : memref<16x1xf32, #tpu.memory_space<vmem>>, vector<16x1xf32>
    %c0_6 = arith.constant 0 : index
    %c0_7 = arith.constant 0 : index
    %c0_8 = arith.constant 0 : index
    %5 = vector.load %arg1[%c0_6, %c0_7, %c0_8] : memref<4x18x72xbf16, #tpu.memory_space<vmem>>, vector<1x18x64xbf16>
    %6 = vector.shape_cast %5 : vector<1x18x64xbf16> to vector<18x64xbf16>
    %7 = arith.extf %6 : vector<18x64xbf16> to vector<18x64xf32>
    %c0_9 = arith.constant 0 : index
    %c0_10 = arith.constant 0 : index
    %c8 = arith.constant 8 : index
    %8 = vector.load %arg1[%c0_9, %c0_10, %c8] : memref<4x18x72xbf16, #tpu.memory_space<vmem>>, vector<1x18x64xbf16>
    %9 = vector.shape_cast %8 : vector<1x18x64xbf16> to vector<18x64xbf16>
    %10 = arith.extf %9 : vector<18x64xbf16> to vector<18x64xf32>
    %cst = arith.constant dense<0.000000e+00> : vector<16x64xf32>
    %11 = tpu.matmul %1, %7, %cst {dimension_numbers = #tpu.dot_dimension_numbers<[1], [0], [0], [1], [0, 0, 1, 1], [], []>} : vector<16x18xf32>, vector<18x64xf32>, vector<16x64xf32> -> vector<16x64xf32>
    %cst_11 = arith.constant dense<0.000000e+00> : vector<16x64xf32>
    %12 = tpu.matmul %3, %10, %cst_11 {dimension_numbers = #tpu.dot_dimension_numbers<[1], [0], [0], [1], [0, 0, 1, 1], [], []>} : vector<16x18xf32>, vector<18x64xf32>, vector<16x64xf32> -> vector<16x64xf32>
    %13 = arith.addf %11, %12 : vector<16x64xf32>
    %14 = vector.broadcast %4 : vector<16x1xf32> to vector<16x64xf32>
    %15 = arith.addf %13, %14 : vector<16x64xf32>
    %cst_12 = arith.constant 0.000000e+00 : f32
    %cst_13 = arith.constant 6.000000e+00 : f32
    %16 = vector.broadcast %cst_12 : f32 to vector<16x64xf32>
    %17 = arith.maximumf %16, %15 : vector<16x64xf32>
    %18 = vector.broadcast %cst_13 : f32 to vector<16x64xf32>
    %19 = arith.minimumf %18, %17 : vector<16x64xf32>
    %20 = arith.truncf %19 : vector<16x64xf32> to vector<16x64xbf16>
    %c0_14 = arith.constant 0 : index
    %c0_15 = arith.constant 0 : index
    %c0_16 = arith.constant 0 : index
    %21 = vector.load %arg4[%c0_14, %c0_15, %c0_16] : memref<4x16x64xbf16, #tpu.memory_space<vmem>>, vector<1x16x64xbf16>
    %22 = vector.shape_cast %21 : vector<1x16x64xbf16> to vector<16x64xbf16>
    %23 = vector.shape_cast %20 : vector<16x64xbf16> to vector<1x16x64xbf16>
    tpu.vector_store %arg4[%c0_14, %c0_15, %c0_16], %23 {strides = array<i32>} : memref<4x16x64xbf16, #tpu.memory_space<vmem>>, vector<1x16x64xbf16>,
    %c1_17 = arith.constant 1 : index
    %c0_18 = arith.constant 0 : index
    %c0_19 = arith.constant 0 : index
    %24 = vector.load %arg1[%c1_17, %c0_18, %c0_19] : memref<4x18x72xbf16, #tpu.memory_space<vmem>>, vector<1x18x64xbf16>
    %25 = vector.shape_cast %24 : vector<1x18x64xbf16> to vector<18x64xbf16>
    %26 = arith.extf %25 : vector<18x64xbf16> to vector<18x64xf32>
    %c1_20 = arith.constant 1 : index
    %c0_21 = arith.constant 0 : index
    %c8_22 = arith.constant 8 : index
    %27 = vector.load %arg1[%c1_20, %c0_21, %c8_22] : memref<4x18x72xbf16, #tpu.memory_space<vmem>>, vector<1x18x64xbf16>
    %28 = vector.shape_cast %27 : vector<1x18x64xbf16> to vector<18x64xbf16>
    %29 = arith.extf %28 : vector<18x64xbf16> to vector<18x64xf32>
    %cst_23 = arith.constant dense<0.000000e+00> : vector<16x64xf32>
    %30 = tpu.matmul %1, %26, %cst_23 {dimension_numbers = #tpu.dot_dimension_numbers<[1], [0], [0], [1], [0, 0, 1, 1], [], []>} : vector<16x18xf32>, vector<18x64xf32>, vector<16x64xf32> -> vector<16x64xf32>
    %cst_24 = arith.constant dense<0.000000e+00> : vector<16x64xf32>
    %31 = tpu.matmul %3, %29, %cst_24 {dimension_numbers = #tpu.dot_dimension_numbers<[1], [0], [0], [1], [0, 0, 1, 1], [], []>} : vector<16x18xf32>, vector<18x64xf32>, vector<16x64xf32> -> vector<16x64xf32>
    %32 = arith.addf %30, %31 : vector<16x64xf32>
    %33 = vector.broadcast %4 : vector<16x1xf32> to vector<16x64xf32>
    %34 = arith.addf %32, %33 : vector<16x64xf32>
    %cst_25 = arith.constant 0.000000e+00 : f32
    %cst_26 = arith.constant 6.000000e+00 : f32
    %35 = vector.broadcast %cst_25 : f32 to vector<16x64xf32>
    %36 = arith.maximumf %35, %34 : vector<16x64xf32>
    %37 = vector.broadcast %cst_26 : f32 to vector<16x64xf32>
    %38 = arith.minimumf %37, %36 : vector<16x64xf32>
    %39 = arith.truncf %38 : vector<16x64xf32> to vector<16x64xbf16>
    %c1_27 = arith.constant 1 : index
    %c0_28 = arith.constant 0 : index
    %c0_29 = arith.constant 0 : index
    %40 = vector.load %arg4[%c1_27, %c0_28, %c0_29] : memref<4x16x64xbf16, #tpu.memory_space<vmem>>, vector<1x16x64xbf16>
    %41 = vector.shape_cast %40 : vector<1x16x64xbf16> to vector<16x64xbf16>
    %42 = vector.shape_cast %39 : vector<16x64xbf16> to vector<1x16x64xbf16>
    tpu.vector_store %arg4[%c1_27, %c0_28, %c0_29], %42 {strides = array<i32>} : memref<4x16x64xbf16, #tpu.memory_space<vmem>>, vector<1x16x64xbf16>,
    %c2 = arith.constant 2 : index
    %c0_30 = arith.constant 0 : index
    %c0_31 = arith.constant 0 : index
    %43 = vector.load %arg1[%c2, %c0_30, %c0_31] : memref<4x18x72xbf16, #tpu.memory_space<vmem>>, vector<1x18x64xbf16>
    %44 = vector.shape_cast %43 : vector<1x18x64xbf16> to vector<18x64xbf16>
    %45 = arith.extf %44 : vector<18x64xbf16> to vector<18x64xf32>
    %c2_32 = arith.constant 2 : index
    %c0_33 = arith.constant 0 : index
    %c8_34 = arith.constant 8 : index
    %46 = vector.load %arg1[%c2_32, %c0_33, %c8_34] : memref<4x18x72xbf16, #tpu.memory_space<vmem>>, vector<1x18x64xbf16>
    %47 = vector.shape_cast %46 : vector<1x18x64xbf16> to vector<18x64xbf16>
    %48 = arith.extf %47 : vector<18x64xbf16> to vector<18x64xf32>
    %cst_35 = arith.constant dense<0.000000e+00> : vector<16x64xf32>
    %49 = tpu.matmul %1, %45, %cst_35 {dimension_numbers = #tpu.dot_dimension_numbers<[1], [0], [0], [1], [0, 0, 1, 1], [], []>} : vector<16x18xf32>, vector<18x64xf32>, vector<16x64xf32> -> vector<16x64xf32>
    %cst_36 = arith.constant dense<0.000000e+00> : vector<16x64xf32>
    %50 = tpu.matmul %3, %48, %cst_36 {dimension_numbers = #tpu.dot_dimension_numbers<[1], [0], [0], [1], [0, 0, 1, 1], [], []>} : vector<16x18xf32>, vector<18x64xf32>, vector<16x64xf32> -> vector<16x64xf32>
    %51 = arith.addf %49, %50 : vector<16x64xf32>
    %52 = vector.broadcast %4 : vector<16x1xf32> to vector<16x64xf32>
    %53 = arith.addf %51, %52 : vector<16x64xf32>
    %cst_37 = arith.constant 0.000000e+00 : f32
    %cst_38 = arith.constant 6.000000e+00 : f32
    %54 = vector.broadcast %cst_37 : f32 to vector<16x64xf32>
    %55 = arith.maximumf %54, %53 : vector<16x64xf32>
    %56 = vector.broadcast %cst_38 : f32 to vector<16x64xf32>
    %57 = arith.minimumf %56, %55 : vector<16x64xf32>
    %58 = arith.truncf %57 : vector<16x64xf32> to vector<16x64xbf16>
    %c2_39 = arith.constant 2 : index
    %c0_40 = arith.constant 0 : index
    %c0_41 = arith.constant 0 : index
    %59 = vector.load %arg4[%c2_39, %c0_40, %c0_41] : memref<4x16x64xbf16, #tpu.memory_space<vmem>>, vector<1x16x64xbf16>
    %60 = vector.shape_cast %59 : vector<1x16x64xbf16> to vector<16x64xbf16>
    %61 = vector.shape_cast %58 : vector<16x64xbf16> to vector<1x16x64xbf16>
    tpu.vector_store %arg4[%c2_39, %c0_40, %c0_41], %61 {strides = array<i32>} : memref<4x16x64xbf16, #tpu.memory_space<vmem>>, vector<1x16x64xbf16>,
    %c3 = arith.constant 3 : index
    %c0_42 = arith.constant 0 : index
    %c0_43 = arith.constant 0 : index
    %62 = vector.load %arg1[%c3, %c0_42, %c0_43] : memref<4x18x72xbf16, #tpu.memory_space<vmem>>, vector<1x18x64xbf16>
    %63 = vector.shape_cast %62 : vector<1x18x64xbf16> to vector<18x64xbf16>
    %64 = arith.extf %63 : vector<18x64xbf16> to vector<18x64xf32>
    %c3_44 = arith.constant 3 : index
    %c0_45 = arith.constant 0 : index
    %c8_46 = arith.constant 8 : index
    %65 = vector.load %arg1[%c3_44, %c0_45, %c8_46] : memref<4x18x72xbf16, #tpu.memory_space<vmem>>, vector<1x18x64xbf16>
    %66 = vector.shape_cast %65 : vector<1x18x64xbf16> to vector<18x64xbf16>
    %67 = arith.extf %66 : vector<18x64xbf16> to vector<18x64xf32>
    %cst_47 = arith.constant dense<0.000000e+00> : vector<16x64xf32>
    %68 = tpu.matmul %1, %64, %cst_47 {dimension_numbers = #tpu.dot_dimension_numbers<[1], [0], [0], [1], [0, 0, 1, 1], [], []>} : vector<16x18xf32>, vector<18x64xf32>, vector<16x64xf32> -> vector<16x64xf32>
    %cst_48 = arith.constant dense<0.000000e+00> : vector<16x64xf32>
    %69 = tpu.matmul %3, %67, %cst_48 {dimension_numbers = #tpu.dot_dimension_numbers<[1], [0], [0], [1], [0, 0, 1, 1], [], []>} : vector<16x18xf32>, vector<18x64xf32>, vector<16x64xf32> -> vector<16x64xf32>
    %70 = arith.addf %68, %69 : vector<16x64xf32>
    %71 = vector.broadcast %4 : vector<16x1xf32> to vector<16x64xf32>
    %72 = arith.addf %70, %71 : vector<16x64xf32>
    %cst_49 = arith.constant 0.000000e+00 : f32
    %cst_50 = arith.constant 6.000000e+00 : f32
    %73 = vector.broadcast %cst_49 : f32 to vector<16x64xf32>
    %74 = arith.maximumf %73, %72 : vector<16x64xf32>
    %75 = vector.broadcast %cst_50 : f32 to vector<16x64xf32>
    %76 = arith.minimumf %75, %74 : vector<16x64xf32>
    %77 = arith.truncf %76 : vector<16x64xf32> to vector<16x64xbf16>
    %c3_51 = arith.constant 3 : index
    %c0_52 = arith.constant 0 : index
    %c0_53 = arith.constant 0 : index
    %78 = vector.load %arg4[%c3_51, %c0_52, %c0_53] : memref<4x16x64xbf16, #tpu.memory_space<vmem>>, vector<1x16x64xbf16>
    %79 = vector.shape_cast %78 : vector<1x16x64xbf16> to vector<16x64xbf16>
    %80 = vector.shape_cast %77 : vector<16x64xbf16> to vector<1x16x64xbf16>
    tpu.vector_store %arg4[%c3_51, %c0_52, %c0_53], %80 {strides = array<i32>} : memref<4x16x64xbf16, #tpu.memory_space<vmem>>, vector<1x16x64xbf16>,
    return
  }
  func.func @transform_0(%arg0: i32) -> (i32, i32, i32) {
    %c0_i32 = arith.constant 0 : i32
    %c0_i32_0 = arith.constant 0 : i32
    %c0_i32_1 = arith.constant 0 : i32
    return %arg0, %c0_i32, %c0_i32_0 : i32, i32, i32
  }
  func.func @transform_1(%arg0: i32) -> (i32, i32, i32) {
    %c0_i32 = arith.constant 0 : i32
    %c0_i32_0 = arith.constant 0 : i32
    %c0_i32_1 = arith.constant 0 : i32
    %c0_i32_2 = arith.constant 0 : i32
    return %c0_i32, %c0_i32_0, %c0_i32_1 : i32, i32, i32
  }
  func.func @transform_2(%arg0: i32) -> (i32, i32) {
    %c0_i32 = arith.constant 0 : i32
    %c0_i32_0 = arith.constant 0 : i32
    %c0_i32_1 = arith.constant 0 : i32
    return %c0_i32, %c0_i32_0 : i32, i32
  }
  func.func @transform_3(%arg0: i32) -> (i32, i32, i32) {
    %c0_i32 = arith.constant 0 : i32
    %c0_i32_0 = arith.constant 0 : i32
    %c0_i32_1 = arith.constant 0 : i32
    return %arg0, %c0_i32, %c0_i32_0 : i32, i32, i32
  }
}

</mosaic_0001>

<bundles_post_ra>
// kernel: tpu_custom_call.1
= control target key start
LH: loop header
LB: loop body
LE: loop exit
PB: predicated region body
PF: predicated region fallthrough
CT: control target
= control target key end

     0   :  { %s1267_s0 = inlined_call_operand.vmem [shape: bf16[4,18,72], index: 0, kind: input, shape index: {}]   ;;  %s1268_s1 = inlined_call_operand.vmem [shape: f32[2,16,18], index: 1, kind: input, shape index: {}]   ;;  %s1269_s2 = inlined_call_operand.vmem [shape: f32[16,1], index: 2, kind: input, shape index: {}]   ;;  %s1270_s3 = inlined_call_operand.hbm [shape: bf16[4,16,64], index: 3, kind: output, shape index: {}]  }
   0x1   :  { %v1126_v0 = vld [vmem:[%s1267_s0] sm:$0xff]   ;;  %v1131_v1 = vld [vmem:[%s1267_s0 + $0xc] sm:$0xff]   ;;  %v24_v2 = vld [vmem:[%s1267_s0 + $0x8] sm:$0x1] }
   0x2   :  { %v870_v3 = vunpack.c.l.bf16 %v1126_v0  ;;  %v871_v4 = vunpack.c.h.bf16 %v1126_v0  ;;  %v238_v5 = vunpack.c.l.bf16 %v1131_v1  ;;  %v239_v6 = vunpack.c.h.bf16 %v1131_v1  ;;  %v829_v7 = vld [vmem:[%s1267_s0 + $0x14] sm:$0x1]  ;;  %v1146_v8 = vld [vmem:[%s1267_s0 + $0x18] sm:$0xff]   ;;  %v1157_v13 = vld [vmem:[%s1267_s0 + $0x24] sm:$0xff]  }
   0x3   :  { %v1148_v9 = vunpack.c.l.bf16 %v24_v2  ;;  %v1150_v10 = vunpack.c.l.bf16 %v829_v7  ;;  %v874_v11 = vunpack.c.l.bf16 %v1146_v8  ;;  %v875_v12 = vunpack.c.h.bf16 %v1146_v8  ;;  %v840_v14 = vld [vmem:[%s1267_s0 + $0x20] sm:$0x1]  ;;  %v851_v16 = vld [vmem:[%s1267_s0 + $0x2c] sm:$0x1]  ;;  %v1168_v17 = vld [vmem:[%s1268_s1 + $0x10] sm:$0xff] }
   0x4   :  { %v1038_v15 = vpack.i.bf16 %v871_v4, %v870_v3 }
   0x5   :  { %8 = vsyncpa [#allocation3], 0  ;;  %v1048_v18 = vpack.i.bf16 %v1150_v10, %v1148_v9  ;;  %s1098_s30 = smov 120   ;;  %v1043_v19 = vpack.i.bf16 %v239_v6, %v238_v5  ;;  %v616_v20 = vunpack.c.l.bf16 %v1157_v13  ;;  %v617_v21 = vunpack.c.h.bf16 %v1157_v13  ;;  %v21_v27 = vld [vmem:[%s1269_s2 + $0x8] sm:$0xff]  ;;  %v20_v28 = vld [vmem:[%s1269_s2] sm:$0xff] }
   0x6   :  { %1039 = vrot.lane.b32.xlu0 %v1038_v15, %s1098_s30  ;;  %vm39_vm0 = vcmask 146432   ;;  %v1053_v22 = vpack.i.bf16 %v875_v12, %v874_v11  ;;  %v1174_v23 = vunpack.c.l.bf16 %v840_v14  ;;  %v1176_v24 = vunpack.c.l.bf16 %v851_v16  ;;  %v818_v42 = vld [vmem:[%s1268_s1 + $0x18] sm:$0xff]  ;;  %v15_v46 = vld [vmem:[%s1268_s1] sm:$0xff]  ;;  %v16_v51 = vld [vmem:[%s1268_s1 + $0x8] sm:$0xff]  ;;  %s1100_s1 = smov [#allocation2]  }
   0x7   :  { %1049 = vrot.lane.b32.xlu1 %v1048_v18, %s1098_s30  ;;  %923 = vmatprep.mubr.msk.f32.mxu0 %vm39_vm0, %v1168_v17  ;;  %v1058_v25 = vpack.i.bf16 %v617_v21, %v616_v20  ;;  %v1099_v29 = vmov 0   ;;  %vm46_vm1 = vcmask 1041408   ;;  %vm231_vm2 = vcmask 519168   ;;  %s806_s12 = sshll.u32 %s1100_s1, 4  ;;  %s807_s12 = int_to_ptr.vmem [resolvable:$true] %s806_s12 }
   0x8   :  { %941 = vmatprep.mubr.msk.f32.mxu1 %vm39_vm0, %v1168_v17  ;;  %v1063_v26 = vpack.i.bf16 %v1176_v24, %v1174_v23  ;;  %1069 = vset.pattern.permute.xlu1 %v1099_v29  ;;  %s1074_s13 = scalar_lea.vmem %s807_s12, 512  ;;  %p1079_p1 = scmp.lt.s32.totalorder %s807_s12, %s807_s12 }
   0x9   :  { %1068 = vset.pattern.permute.xlu0 %v1099_v29  ;;  %p1075_p0 = scmp.ne.s32.totalorder %s807_s12, %s1074_s13  ;;  %p1080_p2 = scmp.lt.s32.totalorder %s1074_s13, %s1074_s13 }
   0xa   :  { %1044 = vrot.lane.b32.xlu0 %v1043_v19, %s1098_s30 }
   0xb   :  { %1054 = vrot.lane.b32.xlu1 %v1053_v22, %s1098_s30  ;;  %p1081_p3 = por %p1080_p2, %p1079_p1 }
   0xd   :  { %p1082_p4 = pnand %p1081_p3, %p1075_p0 }
   0xe   :  { %1059 = vrot.lane.b32.xlu0 %v1058_v25, %s1098_s30 }
   0xf   :  { %1064 = vrot.lane.b32.xlu1 %v1063_v26, %s1098_s30 }
  0x12   :  { %209 = vperm.xlu0 %1068, %v20_v28  }
  0x13   :  { %214 = vperm.xlu1 %1069, %v21_v27  }
  0x78   :  { %v1040_v30 = vpop.permute.xlu0 %1039 }
  0x79   :  { %v1042_v31 = vunpack.i.h.bf16 %v1040_v30  ;;  %v1041_v32 = vunpack.i.l.bf16 %v1040_v30  ;;  %v1050_v33 = vpop.permute.xlu1 %1049 }
  0x7a   :  { %v1051_v35 = vunpack.i.l.bf16 %v1050_v33  ;;  %v1052_v41 = vunpack.i.h.bf16 %v1050_v33 }
  0x7b   :  { %v989_v34 = vpack.c.bf16 %v1042_v31, %v1041_v32 }
  0x7c   :  { %v1045_v36 = vpop.permute.xlu0 %1044 }
  0x7d   :  { %v1047_v37 = vunpack.i.h.bf16 %v1045_v36  ;;  %v1046_v38 = vunpack.i.l.bf16 %v1045_v36  ;;  %990 = vmatprep.subr.bf16.mxu0 %v989_v34  ;;  %v1055_v39 = vpop.permute.xlu1 %1054 }
  0x7e   :  { %992 = vmatpush3.bf16.msra.mxu0 %v989_v34  ;;  %v1057_v43 = vunpack.i.h.bf16 %v1055_v39  ;;  %v1056_v44 = vunpack.i.l.bf16 %v1055_v39 }
  0x7f   :  { %921 = vmatprep.subr.msk.mxu0 %vm46_vm1, %v1051_v35  ;;  %v997_v40 = vpack.c.bf16 %v1047_v37, %v1046_v38 }
  0x80   :  { %v1060_v45 = vpop.permute.xlu0 %1059  ;;  %v1005_v47 = vpack.c.bf16 %v1057_v43, %v1056_v44 }
  0x81   :  { %998 = vmatprep.subr.bf16.mxu1 %v997_v40  ;;  %v1062_v48 = vunpack.i.h.bf16 %v1060_v45  ;;  %v1061_v49 = vunpack.i.l.bf16 %v1060_v45  ;;  %v1065_v50 = vpop.permute.xlu1 %1064 }
  0x82   :  { %922 = vmatpush3.msk.msra.mxu0 %vm46_vm1, %v1051_v35  ;;  %1000 = vmatpush3.bf16.msra.mxu1 %v997_v40  ;;  %v1066_v53 = vunpack.i.l.bf16 %v1065_v50  ;;  %v1067_v54 = vunpack.i.h.bf16 %v1065_v50 }
  0x83   :  { %924 = vmatmul.mubr.msk.f32.vlgmr.msra.gmra.mrb[0].mxu0 %vm39_vm0, %v818_v42  ;;  %994 = vmatprep.subr.bf16.mxu0 %v1126_v0  ;;  %v1013_v52 = vpack.c.bf16 %v1062_v48, %v1061_v49 }
  0x84   :  { %996 = vmatpush3.bf16.msra.mxu0 %v1126_v0  ;;  %939 = vmatprep.subr.msk.mxu1 %vm46_vm1, %v1052_v41 }
  0x85   :  { %930 = vmatprep.subr.msk.mxu0 %vm46_vm1, %v1148_v9  ;;  %932 = vmatprep.mubr.msk.f32.mxu0 %vm39_vm0, %v15_v46 }
  0x86   :  { %940 = vmatpush3.msk.msra.mxu1 %vm46_vm1, %v1052_v41 }
  0x87   :  { %942 = vmatmul.mubr.msk.f32.vlgmr.msra.gmra.mrb[0].mxu1 %vm39_vm0, %v818_v42  ;;  %1002 = vmatprep.subr.bf16.mxu1 %v1131_v1 }
  0x88   :  { %1004 = vmatpush3.bf16.msra.mxu1 %v1131_v1  ;;  %931 = vmatpush3.msk.msra.mxu0 %vm46_vm1, %v1148_v9 }
  0x89   :  { %1006 = vmatprep.subr.bf16.mxu0 %v1005_v47  ;;  %948 = vmatprep.subr.msk.mxu1 %vm46_vm1, %v1150_v10 }
  0x8a   :  { %950 = vmatprep.mubr.msk.f32.mxu1 %vm39_vm0, %v15_v46 }
  0x8b   :  { %933 = vmatmul.mubr.msk.f32.vlgmr.msra.gmra.mrb[0].mxu0 %vm39_vm0, %v16_v51 }
  0x8c   :  { %1008 = vmatpush3.bf16.msra.mxu0 %v1005_v47  ;;  %949 = vmatpush3.msk.msra.mxu1 %vm46_vm1, %v1150_v10 }
  0x8d   :  { %957 = vmatprep.subr.msk.mxu0 %vm46_vm1, %v1066_v53  ;;  %1014 = vmatprep.subr.bf16.mxu1 %v1013_v52 }
  0x8e   :  { %959 = vmatprep.mubr.msk.f32.mxu0 %vm39_vm0, %v1168_v17 }
  0x8f   :  { %951 = vmatmul.mubr.msk.f32.vlgmr.msra.gmra.mrb[0].mxu1 %vm39_vm0, %v16_v51 }
  0x90   :  { %958 = vmatpush3.msk.msra.mxu0 %vm46_vm1, %v1066_v53  ;;  %1016 = vmatpush3.bf16.msra.mxu1 %v1013_v52 }
  0x91   :  { %960 = vmatmul.mubr.msk.f32.vlgmr.msra.gmra.mrb[2].mxu0 %vm39_vm0, %v818_v42  ;;  %1010 = vmatprep.subr.bf16.mxu0 %v1146_v8  ;;  %v210_v56 = vpop.permute.xlu0 %209 }
  0x92   :  { %975 = vmatprep.subr.msk.mxu1 %vm46_vm1, %v1067_v54  ;;  %1012 = vmatpush3.bf16.msra.mxu0 %v1146_v8  ;;  %v215_v55 = vpop.permute.xlu1 %214 }
  0x93   :  { %977 = vmatprep.mubr.msk.f32.mxu1 %vm39_vm0, %v1168_v17  ;;  %966 = vmatprep.subr.msk.mxu0 %vm46_vm1, %v1174_v23 }
  0x94   :  { %976 = vmatpush3.msk.msra.mxu1 %vm46_vm1, %v1067_v54  ;;  %968 = vmatprep.mubr.msk.f32.mxu0 %vm39_vm0, %v15_v46 }
  0x95   :  { %978 = vmatmul.mubr.msk.f32.vlgmr.msra.gmra.mrb[2].mxu1 %vm39_vm0, %v818_v42  ;;  %1018 = vmatprep.subr.bf16.mxu1 %v1157_v13 }
  0x96   :  { %1020 = vmatpush3.bf16.msra.mxu1 %v1157_v13  ;;  %967 = vmatpush3.msk.msra.mxu0 %vm46_vm1, %v1174_v23 }
  0x97   :  { %984 = vmatprep.subr.msk.mxu1 %vm46_vm1, %v1176_v24  ;;  %986 = vmatprep.mubr.msk.f32.mxu1 %vm39_vm0, %v15_v46 }
  0x99   :  { %969 = vmatmul.mubr.msk.f32.vlgmr.msra.gmra.mrb[2].mxu0 %vm39_vm0, %v16_v51 }
  0x9a   :  { %985 = vmatpush3.msk.msra.mxu1 %vm46_vm1, %v1176_v24 }
  0x9d   :  { %987 = vmatmul.mubr.msk.f32.vlgmr.msra.gmra.mrb[2].mxu1 %vm39_vm0, %v16_v51 }
 0x15e   :  { %v934_v57 = vpop.f32.mrb[0].mxu0 }
 0x15f   :  { %v218_v58 = vadd.f32 %v934_v57, %v215_v55  ;;  %v198_v59 = vpop.f32.mrb[1].mxu0 }
 0x160   :  { %v217_v60 = vadd.f32 %v210_v56, %v198_v59 }
 0x161   :  { %v220_v61 = vmax.f32 %v218_v58, 0.0 }
 0x162   :  { %v219_v62 = vmax.f32 %v217_v60, 0.0  ;;  %v952_v63 = vpop.f32.mrb[0].mxu1 }
 0x163   :  { %v222_v0 = vmin.f32 %v220_v61, 6.0  ;;  %v407_v1 = vadd.f32 %v952_v63, %v215_v55  ;;  %v397_v2 = vpop.f32.mrb[1].mxu1 }
 0x164   :  { %v221_v3 = vmin.f32 %v219_v62, 6.0  ;;  %v406_v4 = vadd.f32 %v397_v2, %v210_v56 }
 0x165   :  { %v861_v5 = vpack.c.bf16 %v222_v0, %v222_v0  ;;  %v409_v6 = vmax.f32 %v407_v1, 0.0 }
 0x166   :  { %v860_v7 = vpack.c.bf16 %v221_v3, %v221_v3  ;;  %v408_v8 = vmax.f32 %v406_v4, 0.0 }
 0x167   :  { %233 = vst.msk [vmem:[#allocation2 + $0x4] sm:$0xf] %vm231_vm2, %v861_v5  ;;  %v411_v9 = vmin.f32 %v409_v6, 6.0 }
 0x168   :  { %232 = vst.msk [vmem:[#allocation2] sm:$0xf] %vm231_vm2, %v860_v7  ;;  %v410_v10 = vmin.f32 %v408_v8, 6.0 }
 0x169   :  { %v863_v11 = vpack.c.bf16 %v411_v9, %v411_v9 }
 0x16a   :  { %v862_v12 = vpack.c.bf16 %v410_v10, %v410_v10 }
 0x16b   :  { %422 = vst.msk [vmem:[#allocation2 + $0xc] sm:$0xf] %vm231_vm2, %v863_v11 }
 0x16c   :  { %421 = vst.msk [vmem:[#allocation2 + $0x8] sm:$0xf] %vm231_vm2, %v862_v12  ;;  %v970_v13 = vpop.f32.mrb[2].mxu0 }
 0x16d   :  { %v596_v14 = vadd.f32 %v970_v13, %v215_v55  ;;  %v586_v15 = vpop.f32.mrb[3].mxu0 }
 0x16e   :  { %v595_v16 = vadd.f32 %v586_v15, %v210_v56 }
 0x16f   :  { %v598_v17 = vmax.f32 %v596_v14, 0.0 }
 0x170   :  { %v597_v18 = vmax.f32 %v595_v16, 0.0  ;;  %v988_v19 = vpop.f32.mrb[2].mxu1 }
 0x171   :  { %v600_v20 = vmin.f32 %v598_v17, 6.0  ;;  %v785_v21 = vadd.f32 %v988_v19, %v215_v55  ;;  %v775_v22 = vpop.f32.mrb[3].mxu1 }
 0x172   :  { %v599_v23 = vmin.f32 %v597_v18, 6.0  ;;  %v784_v24 = vadd.f32 %v775_v22, %v210_v56 }
 0x173   :  { %v865_v25 = vpack.c.bf16 %v600_v20, %v600_v20  ;;  %v787_v26 = vmax.f32 %v785_v21, 0.0 }
 0x174   :  { %v864_v27 = vpack.c.bf16 %v599_v23, %v599_v23  ;;  %v786_v28 = vmax.f32 %v784_v24, 0.0 }
 0x175   :  { %611 = vst.msk [vmem:[#allocation2 + $0x14] sm:$0xf] %vm231_vm2, %v865_v25  ;;  %v789_v29 = vmin.f32 %v787_v26, 6.0 }
 0x176   :  { %610 = vst.msk [vmem:[#allocation2 + $0x10] sm:$0xf] %vm231_vm2, %v864_v27  ;;  %v788_v30 = vmin.f32 %v786_v28, 6.0 }
 0x177   :  { %v867_v31 = vpack.c.bf16 %v789_v29, %v789_v29 }
 0x178   :  { %v866_v32 = vpack.c.bf16 %v788_v30, %v788_v30 }
 0x179   :  { %800 = vst.msk [vmem:[#allocation2 + $0x1c] sm:$0xf] %vm231_vm2, %v867_v31 }
 0x17a   :  { %799 = vst.msk [vmem:[#allocation2 + $0x18] sm:$0xf] %vm231_vm2, %v866_v32 }
 0x17b   :  { %1085 = shalt.err (!%p1082_p4)
}
 0x17c   :  { %s1086_s16 = scalar_lea.hbm %s1270_s3, 512 }
 0x17d   :  { %p1087_p5 = scmp.ne.s32.totalorder %s1270_s3, %s1086_s16  ;;  %p1090_p6 = scmp.lt.u32.totalorder %s1086_s16, %s1270_s3 }
 0x17f   :  { %p1092_p7 = pnand %p1090_p6, %p1087_p5 }
 0x181   :  { %1095 = shalt.err (!%p1092_p7)
}
 0x182   :  { %s1101_s21 = smov 64   ;;  %s1102_s22 = smov 4  }
 0x183   :  { %812 = dma.vmem_to_hbm [thread:$0]  %s807_s12, 512, %s1270_s3, [#allocation3], %s1101_s21, %s1101_s21, %s1102_s22  }
 0x184   :  { %1096 = dma.done.wait [#allocation3], 512  }
 0x185   :  { %1097 = vsyncadd [#allocation3], 4294966784 }
 0x186   :  { %816 = vsyncpa [#allocation3], 1 }

</bundles_post_ra>
